<compile_context>
chip_gen: v7x
topology: tpu7x:2x2x1
jax: 0.10.0
libtpu: 0.0.40
codegen_flags: <defaults>
</compile_context>

<pallas_src>
import functools

import jax
import jax.numpy as jnp
from jax.experimental import pallas as pl
from jax.experimental.pallas import tpu as pltpu

IN_DIM = 6
Z_DIM = 3
H1 = 32
H2 = 16

# ---- lane-dense I/O row layout (features on sublanes, batch on lanes) ------
IN_ROWS = 16            # rows 0:6 = x, 6:8 zero, 8:11 = eps, 11:16 zero
EPS_ROW = 8
OUT_ROWS = 16           # rows 0:6 recon, 6:8 junk, 8:11 mu, 11:14 logvar, 14:16 zero
RECON_ROW = 0
MU_ROW = 8
LOGVAR_ROW = 11

# ---- packed transposed parameter slab: (P_ROWS, P_COLS) bf16 ---------------
# All row offsets are multiples of 16 (bf16 sublane tile) so per-step weight
# reads stay on the unmasked path.  Unused entries are zero by construction.
W1T_R = 0      # (H1, 8)  = w1^T, K padded 6->8
W2T_R = 32     # (H2, H1) = w2^T
WHT_R = 48     # (16, H2) = [w31^T ; w32^T ; 0]   fused mu||logvar head
W4T_R = 64     # (H2, 8)  = w4^T, K padded 3->8
W5T_R = 80     # (H1, H2) = w5^T
W6T_R = 112    # (16, H1) = [w6^T ; 0]
BIAS_R = 128   # (32, 8)  column j = bias j: b1, b2, bh, b4, b5, b6
P_ROWS = 160
P_COLS = 32


def _vae_kernel(xin_ref, p_ref, out_ref):
    f32 = jnp.float32
    bf16 = jnp.bfloat16
    dot = functools.partial(jnp.dot, preferred_element_type=f32)

    xin = xin_ref[...]                              # (16, tb) f32
    x8 = xin[0:8, :].astype(bf16)                   # rows 6,7 are zero padding
    eps = xin[EPS_ROW:EPS_ROW + Z_DIM, :]           # (3, tb) f32

    # Static slices of the VMEM-resident slab; weights stay bf16 (MXU-native),
    # biases are upcast once to f32.
    w1t = p_ref[W1T_R:W1T_R + H1, 0:8]
    w2t = p_ref[W2T_R:W2T_R + H2, 0:H1]
    wht = p_ref[WHT_R:WHT_R + 16, 0:H2]
    w4t = p_ref[W4T_R:W4T_R + H2, 0:8]
    w5t = p_ref[W5T_R:W5T_R + H1, 0:H2]
    w6t = p_ref[W6T_R:W6T_R + 16, 0:H1]
    bias = p_ref[BIAS_R:BIAS_R + 32, :].astype(f32)  # (32, 32)
    b1 = bias[0:H1, 0:1]
    b2 = bias[0:H2, 1:2]
    bh = bias[0:16, 2:3]
    b4 = bias[0:H2, 3:4]
    b5 = bias[0:H1, 4:5]
    b6 = bias[0:16, 5:6]

    # ---- encoder (feature-major, batch in lanes -> N = tb per matmul) ----
    h1 = jnp.maximum(dot(w1t, x8) + b1, 0.0)                     # (32, tb) f32
    h2 = jnp.maximum(dot(w2t, h1.astype(bf16)) + b2, 0.0)        # (16, tb)
    head = dot(wht, h2.astype(bf16)) + bh                        # (16, tb): mu 0:3, logvar 3:6, zeros 6:16
    mu = head[0:Z_DIM, :]
    logvar = head[Z_DIM:2 * Z_DIM, :]

    # ---- reparameterize: z = mu + eps * exp(0.5 * logvar) ----
    z = mu + eps * jnp.exp(0.5 * logvar)                         # (3, tb) f32
    z8 = jnp.concatenate(
        [z, jnp.zeros((8 - Z_DIM, z.shape[1]), f32)], axis=0).astype(bf16)

    # ---- decoder ----
    h4 = jnp.maximum(dot(w4t, z8) + b4, 0.0)                     # (16, tb)
    h5 = jnp.maximum(dot(w5t, h4.astype(bf16)) + b5, 0.0)        # (32, tb)
    logits = dot(w6t, h5.astype(bf16)) + b6                      # (16, tb), rows 6:16 zero
    # sigmoid(x) == 0.5*tanh(0.5*x)+0.5  (EUP slot instead of a VALU divide)
    recon8 = 0.5 * jnp.tanh(0.5 * logits[0:8, :]) + 0.5

    # Two aligned, lane-dense stores; head is written directly (no repack).
    out_ref[0:8, :] = recon8
    out_ref[8:16, :] = head[0:8, :]


def _round_up(a, m):
    return ((a + m - 1) // m) * m


@functools.partial(jax.jit, static_argnames=("tile_b",))
def vae_forward(x, eps, packed_params, *, tile_b=4096):
    """x: (..., IN_DIM) f32, eps: (B, Z_DIM) f32, packed_params: (P_ROWS, P_COLS) bf16."""
    x = x.reshape(-1, IN_DIM)                       # mirrors x.view(-1, input)
    eps = eps.reshape(-1, Z_DIM)
    B = x.shape[0]

    # Batch lives in lanes -> tile must be a multiple of 128.  Cap it so the
    # grid has >=2 steps when possible (both v7x TensorCores busy); harmless
    # on single-TC v5e/v6e.
    tile_b = max(128, _round_up(tile_b, 128))
    tb = min(tile_b, max(128, _round_up(pl.cdiv(B, 2), 128)))
    Bp = _round_up(B, tb)

    # Single lane-dense input slab: x rows 0:6, eps rows 8:11, rest zero.
    xin = jnp.zeros((Bp, IN_ROWS), jnp.float32)
    xin = xin.at[:B, 0:IN_DIM].set(x)
    xin = xin.at[:B, EPS_ROW:EPS_ROW + Z_DIM].set(eps)
    xin = xin.T                                     # (16, Bp)

    grid = Bp // tb
    out = pl.pallas_call(
        _vae_kernel,
        out_shape=jax.ShapeDtypeStruct((OUT_ROWS, Bp), jnp.float32),
        grid=(grid,),
        in_specs=[
            pl.BlockSpec((IN_ROWS, tb), lambda i: (0, i)),
            # full-array block, constant index_map -> DMA'd once, VMEM-resident
            pl.BlockSpec((P_ROWS, P_COLS), lambda i: (0, 0)),
        ],
        out_specs=pl.BlockSpec((OUT_ROWS, tb), lambda i: (0, i)),
        compiler_params=pltpu.CompilerParams(
            dimension_semantics=("parallel",),
            vmem_limit_bytes=32 * 1024 * 1024,
        ),
        cost_estimate=pl.CostEstimate(
            flops=2 * 1552 * Bp,                    # 1552 MACs per sample
            transcendentals=9 * Bp,                 # 3 exp + 6 tanh per sample
            bytes_accessed=(IN_ROWS + OUT_ROWS) * 4 * Bp + P_ROWS * P_COLS * 2,
        ),
    )(xin, packed_params)

    recon = out[RECON_ROW:RECON_ROW + IN_DIM, :B].T
    mu = out[MU_ROW:MU_ROW + Z_DIM, :B].T
    logvar = out[LOGVAR_ROW:LOGVAR_ROW + Z_DIM, :B].T
    return recon, mu, logvar


def init_params(key):
    """PyTorch nn.Linear-style init (U[-1/sqrt(in), 1/sqrt(in)]).
    Weights stored (in_features, out_features); biases (1, out_features)."""
    dims = [
        ("1", IN_DIM, H1),
        ("2", H1, H2),
        ("31", H2, Z_DIM),
        ("32", H2, Z_DIM),
        ("4", Z_DIM, H2),
        ("5", H2, H1),
        ("6", H1, IN_DIM),
    ]
    params = {}
    keys = jax.random.split(key, 2 * len(dims))
    for i, (name, fin, fout) in enumerate(dims):
        bound = 1.0 / jnp.sqrt(jnp.float32(fin))
        params[f"w{name}"] = jax.random.uniform(
            keys[2 * i], (fin, fout), jnp.float32, minval=-bound, maxval=bound)
        params[f"b{name}"] = jax.random.uniform(
            keys[2 * i + 1], (1, fout), jnp.float32, minval=-bound, maxval=bound)
    return params


def pack_params(p):
    """Pack transposed weights + column biases into one (P_ROWS, P_COLS) bf16 slab."""
    buf = jnp.zeros((P_ROWS, P_COLS), jnp.float32)
    buf = buf.at[W1T_R:W1T_R + H1, 0:IN_DIM].set(p["w1"].T)
    buf = buf.at[W2T_R:W2T_R + H2, 0:H1].set(p["w2"].T)
    w_head = jnp.concatenate([p["w31"], p["w32"]], axis=1).T       # (6, 16)
    buf = buf.at[WHT_R:WHT_R + 2 * Z_DIM, 0:H2].set(w_head)
    buf = buf.at[W4T_R:W4T_R + H2, 0:Z_DIM].set(p["w4"].T)
    buf = buf.at[W5T_R:W5T_R + H1, 0:H2].set(p["w5"].T)
    buf = buf.at[W6T_R:W6T_R + IN_DIM, 0:H1].set(p["w6"].T)
    # biases as columns of the bias block
    buf = buf.at[BIAS_R:BIAS_R + H1, 0].set(p["b1"][0])
    buf = buf.at[BIAS_R:BIAS_R + H2, 1].set(p["b2"][0])
    b_head = jnp.concatenate([p["b31"], p["b32"]], axis=1)[0]      # (6,)
    buf = buf.at[BIAS_R:BIAS_R + 2 * Z_DIM, 2].set(b_head)
    buf = buf.at[BIAS_R:BIAS_R + H2, 3].set(p["b4"][0])
    buf = buf.at[BIAS_R:BIAS_R + H1, 4].set(p["b5"][0])
    buf = buf.at[BIAS_R:BIAS_R + IN_DIM, 5].set(p["b6"][0])
    return buf.astype(jnp.bfloat16)


def vae_reference_f32(x, eps, p):
    """Pure-f32 JAX reference of the same forward pass."""
    h1 = jax.nn.relu(x @ p["w1"] + p["b1"])
    h2 = jax.nn.relu(h1 @ p["w2"] + p["b2"])
    mu = h2 @ p["w31"] + p["b31"]
    logvar = h2 @ p["w32"] + p["b32"]
    z = mu + eps * jnp.exp(0.5 * logvar)
    h4 = jax.nn.relu(z @ p["w4"] + p["b4"])
    h5 = jax.nn.relu(h4 @ p["w5"] + p["b5"])
    recon = jax.nn.sigmoid(h5 @ p["w6"] + p["b6"])
    return recon, mu, logvar


def vae_reference_mixed(x, eps, p):
    """Reference matching the kernel's numerics: bf16 dot operands (weights,
    biases and activations rounded to bf16), f32 accumulation and elementwise."""
    bf = jnp.bfloat16
    f32 = jnp.float32

    def lin(a, w, b):
        y = jnp.dot(a.astype(bf), w.astype(bf), preferred_element_type=f32)
        return y + b.astype(bf).astype(f32)

    h1 = jax.nn.relu(lin(x, p["w1"], p["b1"]))
    h2 = jax.nn.relu(lin(h1, p["w2"], p["b2"]))
    mu = lin(h2, p["w31"], p["b31"])
    logvar = lin(h2, p["w32"], p["b32"])
    z = mu + eps * jnp.exp(0.5 * logvar)
    h4 = jax.nn.relu(lin(z, p["w4"], p["b4"]))
    h5 = jax.nn.relu(lin(h4, p["w5"], p["b5"]))
    recon = jax.nn.sigmoid(lin(h5, p["w6"], p["b6"]))
    return recon, mu, logvar


if __name__ == "__main__":
    key = jax.random.PRNGKey(0)
    k_param, k_x, k_eps = jax.random.split(key, 3)

    B = 200                      # small batch; exercises grid=2 + batch padding
    params = init_params(k_param)
    packed = pack_params(params)
    x = jax.random.normal(k_x, (B, IN_DIM), jnp.float32)
    # TODO(synk): torch.randn_like(std) noise is sampled here (host-side) and
    # passed as data rather than generated in-kernel with pltpu.prng_random_bits.
    eps = jax.random.normal(k_eps, (B, Z_DIM), jnp.float32)

    recon, mu, logvar = vae_forward(x, eps, packed)
    jax.block_until_ready((recon, mu, logvar))

    # Tight check vs a reference with identical (bf16-operand) math.
    r_m, mu_m, lv_m = vae_reference_mixed(x, eps, params)
    assert jnp.allclose(recon, r_m, atol=2e-3, rtol=2e-3)
    assert jnp.allclose(mu, mu_m, atol=2e-3, rtol=2e-3)
    assert jnp.allclose(logvar, lv_m, atol=2e-3, rtol=2e-3)

    # End-to-end check vs the pure-f32 reference (bf16 MXU operands -> ~1e-3 error).
    r_f, mu_f, lv_f = vae_reference_f32(x, eps, params)
    assert jnp.allclose(recon, r_f, atol=2e-2, rtol=2e-2)
    assert jnp.allclose(mu, mu_f, atol=2e-2, rtol=2e-2)
    assert jnp.allclose(logvar, lv_f, atol=2e-2, rtol=2e-2)

    print("KERNEL_OK")
</pallas_src>

<mosaic_0001>
module attributes {stable_mosaic.version = 11 : i64} {
  func.func @_vae_kernel(%arg0: i32, %arg1: memref<16x128xf32, #tpu.memory_space<vmem>>, %arg2: memref<160x32xbf16, #tpu.memory_space<vmem>>, %arg3: memref<16x128xf32, #tpu.memory_space<vmem>>) attributes {dimension_semantics = [#tpu.dimension_semantics<parallel>], iteration_bounds = array<i64: 2>, scalar_prefetch = 0 : i64, scratch_operands = 0 : i64, tpu.core_type = #tpu.core_type<tc>, window_params = [{transform_indices = @transform_0, window_bounds = array<i64: 16, 128>}, {pipeline_mode = #tpu.pipeline_mode<synchronous>, transform_indices = @transform_1, window_bounds = array<i64: 160, 32>}, {transform_indices = @transform_2, window_bounds = array<i64: 16, 128>}]} {
    %c0 = arith.constant 0 : index
    %c0_0 = arith.constant 0 : index
    %0 = vector.load %arg1[%c0, %c0_0] : memref<16x128xf32, #tpu.memory_space<vmem>>, vector<16x128xf32>
    %1 = vector.extract_strided_slice %0 {offsets = [0, 0], sizes = [8, 128], strides = [1, 1]} : vector<16x128xf32> to vector<8x128xf32>
    %2 = arith.truncf %1 : vector<8x128xf32> to vector<8x128xbf16>
    %3 = vector.extract_strided_slice %0 {offsets = [8, 0], sizes = [3, 128], strides = [1, 1]} : vector<16x128xf32> to vector<3x128xf32>
    %c0_1 = arith.constant 0 : index
    %c0_2 = arith.constant 0 : index
    %4 = vector.load %arg2[%c0_1, %c0_2] : memref<160x32xbf16, #tpu.memory_space<vmem>>, vector<32x8xbf16>
    %c32 = arith.constant 32 : index
    %c0_3 = arith.constant 0 : index
    %5 = vector.load %arg2[%c32, %c0_3] : memref<160x32xbf16, #tpu.memory_space<vmem>>, vector<16x32xbf16>
    %c48 = arith.constant 48 : index
    %c0_4 = arith.constant 0 : index
    %6 = vector.load %arg2[%c48, %c0_4] : memref<160x32xbf16, #tpu.memory_space<vmem>>, vector<16x16xbf16>
    %c64 = arith.constant 64 : index
    %c0_5 = arith.constant 0 : index
    %7 = vector.load %arg2[%c64, %c0_5] : memref<160x32xbf16, #tpu.memory_space<vmem>>, vector<16x8xbf16>
    %c80 = arith.constant 80 : index
    %c0_6 = arith.constant 0 : index
    %8 = vector.load %arg2[%c80, %c0_6] : memref<160x32xbf16, #tpu.memory_space<vmem>>, vector<32x16xbf16>
    %c112 = arith.constant 112 : index
    %c0_7 = arith.constant 0 : index
    %9 = vector.load %arg2[%c112, %c0_7] : memref<160x32xbf16, #tpu.memory_space<vmem>>, vector<16x32xbf16>
    %c128 = arith.constant 128 : index
    %c0_8 = arith.constant 0 : index
    %10 = vector.load %arg2[%c128, %c0_8] : memref<160x32xbf16, #tpu.memory_space<vmem>>, vector<32x32xbf16>
    %11 = arith.extf %10 : vector<32x32xbf16> to vector<32x32xf32>
    %12 = vector.extract_strided_slice %11 {offsets = [0, 0], sizes = [32, 1], strides = [1, 1]} : vector<32x32xf32> to vector<32x1xf32>
    %13 = vector.extract_strided_slice %11 {offsets = [0, 1], sizes = [16, 1], strides = [1, 1]} : vector<32x32xf32> to vector<16x1xf32>
    %14 = vector.extract_strided_slice %11 {offsets = [0, 2], sizes = [16, 1], strides = [1, 1]} : vector<32x32xf32> to vector<16x1xf32>
    %15 = vector.extract_strided_slice %11 {offsets = [0, 3], sizes = [16, 1], strides = [1, 1]} : vector<32x32xf32> to vector<16x1xf32>
    %16 = vector.extract_strided_slice %11 {offsets = [0, 4], sizes = [32, 1], strides = [1, 1]} : vector<32x32xf32> to vector<32x1xf32>
    %17 = vector.extract_strided_slice %11 {offsets = [0, 5], sizes = [16, 1], strides = [1, 1]} : vector<32x32xf32> to vector<16x1xf32>
    %cst = arith.constant dense<0.000000e+00> : vector<32x128xf32>
    %18 = tpu.matmul %4, %2, %cst {dimension_numbers = #tpu.dot_dimension_numbers<[1], [0], [0], [1], [0, 0, 1, 1], [], []>} : vector<32x8xbf16>, vector<8x128xbf16>, vector<32x128xf32> -> vector<32x128xf32>
    %19 = vector.broadcast %12 : vector<32x1xf32> to vector<32x128xf32>
    %20 = arith.addf %18, %19 : vector<32x128xf32>
    %cst_9 = arith.constant 0.000000e+00 : f32
    %21 = vector.broadcast %cst_9 : f32 to vector<32x128xf32>
    %22 = arith.maximumf %20, %21 : vector<32x128xf32>
    %23 = arith.truncf %22 : vector<32x128xf32> to vector<32x128xbf16>
    %cst_10 = arith.constant dense<0.000000e+00> : vector<16x128xf32>
    %24 = tpu.matmul %5, %23, %cst_10 {dimension_numbers = #tpu.dot_dimension_numbers<[1], [0], [0], [1], [0, 0, 1, 1], [], []>} : vector<16x32xbf16>, vector<32x128xbf16>, vector<16x128xf32> -> vector<16x128xf32>
    %25 = vector.broadcast %13 : vector<16x1xf32> to vector<16x128xf32>
    %26 = arith.addf %24, %25 : vector<16x128xf32>
    %cst_11 = arith.constant 0.000000e+00 : f32
    %27 = vector.broadcast %cst_11 : f32 to vector<16x128xf32>
    %28 = arith.maximumf %26, %27 : vector<16x128xf32>
    %29 = arith.truncf %28 : vector<16x128xf32> to vector<16x128xbf16>
    %cst_12 = arith.constant dense<0.000000e+00> : vector<16x128xf32>
    %30 = tpu.matmul %6, %29, %cst_12 {dimension_numbers = #tpu.dot_dimension_numbers<[1], [0], [0], [1], [0, 0, 1, 1], [], []>} : vector<16x16xbf16>, vector<16x128xbf16>, vector<16x128xf32> -> vector<16x128xf32>
    %31 = vector.broadcast %14 : vector<16x1xf32> to vector<16x128xf32>
    %32 = arith.addf %30, %31 : vector<16x128xf32>
    %33 = vector.extract_strided_slice %32 {offsets = [0, 0], sizes = [3, 128], strides = [1, 1]} : vector<16x128xf32> to vector<3x128xf32>
    %34 = vector.extract_strided_slice %32 {offsets = [3, 0], sizes = [3, 128], strides = [1, 1]} : vector<16x128xf32> to vector<3x128xf32>
    %cst_13 = arith.constant 5.000000e-01 : f32
    %35 = vector.broadcast %cst_13 : f32 to vector<3x128xf32>
    %36 = arith.mulf %35, %34 : vector<3x128xf32>
    %37 = math.exp %36 : vector<3x128xf32>
    %38 = arith.mulf %3, %37 : vector<3x128xf32>
    %39 = arith.addf %33, %38 : vector<3x128xf32>
    %cst_14 = arith.constant 0.000000e+00 : f32
    %40 = vector.broadcast %cst_14 : f32 to vector<5x128xf32>
    %41 = tpu.concatenate %39, %40 in 0 : vector<3x128xf32>, vector<5x128xf32> -> vector<8x128xf32>
    %42 = arith.truncf %41 : vector<8x128xf32> to vector<8x128xbf16>
    %cst_15 = arith.constant dense<0.000000e+00> : vector<16x128xf32>
    %43 = tpu.matmul %7, %42, %cst_15 {dimension_numbers = #tpu.dot_dimension_numbers<[1], [0], [0], [1], [0, 0, 1, 1], [], []>} : vector<16x8xbf16>, vector<8x128xbf16>, vector<16x128xf32> -> vector<16x128xf32>
    %44 = vector.broadcast %15 : vector<16x1xf32> to vector<16x128xf32>
    %45 = arith.addf %43, %44 : vector<16x128xf32>
    %cst_16 = arith.constant 0.000000e+00 : f32
    %46 = vector.broadcast %cst_16 : f32 to vector<16x128xf32>
    %47 = arith.maximumf %45, %46 : vector<16x128xf32>
    %48 = arith.truncf %47 : vector<16x128xf32> to vector<16x128xbf16>
    %cst_17 = arith.constant dense<0.000000e+00> : vector<32x128xf32>
    %49 = tpu.matmul %8, %48, %cst_17 {dimension_numbers = #tpu.dot_dimension_numbers<[1], [0], [0], [1], [0, 0, 1, 1], [], []>} : vector<32x16xbf16>, vector<16x128xbf16>, vector<32x128xf32> -> vector<32x128xf32>
    %50 = vector.broadcast %16 : vector<32x1xf32> to vector<32x128xf32>
    %51 = arith.addf %49, %50 : vector<32x128xf32>
    %cst_18 = arith.constant 0.000000e+00 : f32
    %52 = vector.broadcast %cst_18 : f32 to vector<32x128xf32>
    %53 = arith.maximumf %51, %52 : vector<32x128xf32>
    %54 = arith.truncf %53 : vector<32x128xf32> to vector<32x128xbf16>
    %cst_19 = arith.constant dense<0.000000e+00> : vector<16x128xf32>
    %55 = tpu.matmul %9, %54, %cst_19 {dimension_numbers = #tpu.dot_dimension_numbers<[1], [0], [0], [1], [0, 0, 1, 1], [], []>} : vector<16x32xbf16>, vector<32x128xbf16>, vector<16x128xf32> -> vector<16x128xf32>
    %56 = vector.broadcast %17 : vector<16x1xf32> to vector<16x128xf32>
    %57 = arith.addf %55, %56 : vector<16x128xf32>
    %58 = vector.extract_strided_slice %57 {offsets = [0, 0], sizes = [8, 128], strides = [1, 1]} : vector<16x128xf32> to vector<8x128xf32>
    %cst_20 = arith.constant 5.000000e-01 : f32
    %59 = vector.broadcast %cst_20 : f32 to vector<8x128xf32>
    %60 = arith.mulf %59, %58 : vector<8x128xf32>
    %61 = math.tanh %60 : vector<8x128xf32>
    %cst_21 = arith.constant 5.000000e-01 : f32
    %62 = vector.broadcast %cst_21 : f32 to vector<8x128xf32>
    %63 = arith.mulf %62, %61 : vector<8x128xf32>
    %cst_22 = arith.constant 5.000000e-01 : f32
    %64 = vector.broadcast %cst_22 : f32 to vector<8x128xf32>
    %65 = arith.addf %63, %64 : vector<8x128xf32>
    %c0_23 = arith.constant 0 : index
    %c0_24 = arith.constant 0 : index
    %66 = vector.load %arg3[%c0_23, %c0_24] : memref<16x128xf32, #tpu.memory_space<vmem>>, vector<8x128xf32>
    tpu.vector_store %arg3[%c0_23, %c0_24], %65 {strides = array<i32>} : memref<16x128xf32, #tpu.memory_space<vmem>>, vector<8x128xf32>,
    %67 = vector.extract_strided_slice %32 {offsets = [0, 0], sizes = [8, 128], strides = [1, 1]} : vector<16x128xf32> to vector<8x128xf32>
    %c8 = arith.constant 8 : index
    %c0_25 = arith.constant 0 : index
    %68 = vector.load %arg3[%c8, %c0_25] : memref<16x128xf32, #tpu.memory_space<vmem>>, vector<8x128xf32>
    tpu.vector_store %arg3[%c8, %c0_25], %67 {strides = array<i32>} : memref<16x128xf32, #tpu.memory_space<vmem>>, vector<8x128xf32>,
    return
  }
  func.func @transform_0(%arg0: i32) -> (i32, i32) {
    %c0_i32 = arith.constant 0 : i32
    %c0_i32_0 = arith.constant 0 : i32
    return %c0_i32, %arg0 : i32, i32
  }
  func.func @transform_1(%arg0: i32) -> (i32, i32) {
    %c0_i32 = arith.constant 0 : i32
    %c0_i32_0 = arith.constant 0 : i32
    %c0_i32_1 = arith.constant 0 : i32
    return %c0_i32, %c0_i32_0 : i32, i32
  }
  func.func @transform_2(%arg0: i32) -> (i32, i32) {
    %c0_i32 = arith.constant 0 : i32
    %c0_i32_0 = arith.constant 0 : i32
    return %c0_i32, %arg0 : i32, i32
  }
}

</mosaic_0001>

<bundles_post_ra>
// kernel: vae_forward.1
= control target key start
LH: loop header
LB: loop body
LE: loop exit
PB: predicated region body
PF: predicated region fallthrough
CT: control target
= control target key end

     0   :  { %s975_s9 = smov 0   ;;  %s977_s10 = smov 0   ;;  %s1119_s0 = inlined_call_operand.vmem [shape: f32[16,256], index: 0, kind: input, shape index: {}]   ;;  %s1120_s1 = inlined_call_operand.vmem [shape: bf16[160,32], index: 1, kind: input, shape index: {}]   ;;  %s1121_s2 = inlined_call_operand.vmem [shape: f32[16,256], index: 2, kind: output, shape index: {}]  }
   0x1   :  { %s979_s11 = smov 0  }
   0x2 LB: > { %s740_s12 = sadd.s32 4294967295, %s950_s11   ;;  %s992_s13 = sadd.s32 1, %s950_s11   ;;  %s950_s11 = sphi %s979_s11, %s1125_s11   ;;  %s946_s10 = sphi %s977_s10, %s1124_s10   ;;  %s942_s9 = sphi %s975_s9, %s1123_s9  }
   0x3   : > { %s16_s14 = ssub.s32 %s950_s11, %s992_s13  ;;  %s19_s15 = sadd.s32 1, %s946_s10 }
   0x4   : > { %p17_p0 = scmp.eq.s32.totalorder %s16_s14, 0  ;;  %p26_p1 = scmp.ne.s32.totalorder %s946_s10, %s942_s9 }
   0x5   : > { %p27_p2 = scmp.eq.s32.totalorder %s950_s11, 0  ;;  %p77_p3 = scmp.eq.s32.totalorder %s740_s12, 1 }
   0x6   : > { %s1003_s16 = scalar_select %p17_p0, %s946_s10, %s19_s15  }
   0x7   : > { %p28_p4 = por %p27_p2, %p26_p1  ;;  %p1005_p5 = por %p77_p3, %p26_p1 }
   0x8   : > { %p743_p6 = scmp.ge.s32.totalorder %s950_s11, 2 }
   0xa   : > { %102 = sbr.rel (%p743_p6) target bundleno = 24 (0x18), region = 20 }
  0x11   : > { %105 = sbr.rel (!%p28_p4) target bundleno = 24 (0x18), region = 24  ;;  %s107_s18 = sand.u32 (%p28_p4), 1, %s946_s10  }
  0x12   : > { %s745_s19 = sshll.u32 (%p28_p4), %s950_s11, 3  ;;  %s744_s20 = sshll.u32 (%p28_p4), %s107_s18, 4 }
  0x13   : > { %s111_s23 = scalar_lea.vmem (%p28_p4), %s1119_s0, %s745_s19  ;;  %s109_s24 = scalar_lea.vmem (%p28_p4), [#allocation2], %s744_s20 }
  0x14   : > { %v141_v0 = vld [vmem:[%s111_s23] sm:$0xff] (%p28_p4)  ;;  %v143_v1 = vld [vmem:[%s111_s23 + $0x10] sm:$0xff] (%p28_p4) }
  0x15   : > { %142 = vst [vmem:[%s109_s24] sm:$0xff] (%p28_p4), %v141_v0  ;;  %144 = vst [vmem:[%s109_s24 + $0x8] sm:$0xff] (%p28_p4), %v143_v1 }
  0x18 PF: > { %p746_p7 = scmp.ge.s32.totalorder %s950_s11, 1  ;;  %p149_p8 = scmp.lt.s32.totalorder %s950_s11, 3 }
  0x1a   : > { %p150_p9 = pnand %p746_p7, %p149_p8 }
  0x1b   : > { %s156_s25 = sand.u32 (!%p150_p9), 1, %s942_s9   ;;  %v904_v2 = vld [vmem:[%s1120_s1] sm:$0xff] (!%p150_p9)   ;;  %vm234_vm0 = vcmask (!%p150_p9), 64512   ;;  %vm241_vm1 = vcmask (!%p150_p9), 1043456   ;;  %v952_v5 = vmov (!%p150_p9), 0   ;;  %v778_v8 = vld [vmem:[%s1120_s1 + $0x48] sm:$0xff] (!%p150_p9)  }
  0x1c   : > { %153 = sbr.rel (%p150_p9) target bundleno = 1422 (0x58e), region = 62  ;;  %s1018_s26 = sshll.u32 (!%p150_p9), %s156_s25, 4  ;;  %v777_v3 = vld [vmem:[%s1120_s1 + $0x40] sm:$0xff] (!%p150_p9)   ;;  %797 = vmatprep.mubr.msk.bf16.mxu0 (!%p150_p9), %vm234_vm0, %v904_v2  ;;  %868 = vset.pattern.permute.xlu0 (!%p150_p9), %v952_v5  ;;  %v775_v10 = vunpack.c.l.bf16 (!%p150_p9), %v778_v8  ;;  %v776_v11 = vunpack.c.h.bf16 (!%p150_p9), %v778_v8  ;;  %v905_v14 = vld [vmem:[%s1120_s1 + $0x8] sm:$0xff] (!%p150_p9)   ;;  %v953_v16 = vmov (!%p150_p9), 0.0   ;;  %vm954_vm2 = vmmov (!%p150_p9), 0  }
  0x1d   : > { %s158_s3 = scalar_lea.vmem (!%p150_p9), [#allocation2], %s1018_s26  ;;  %v1030_v6 = vunpack.c.l.bf16 (!%p150_p9), %v777_v3  ;;  %v772_v7 = vunpack.c.h.bf16 (!%p150_p9), %v777_v3  ;;  %801 = vmatprep.subr.bf16.mxu1 (!%p150_p9), %v953_v16  ;;  %805 = vmatprep.mubr.msk.bf16.mxu1 (!%p150_p9), %vm954_vm2, %v953_v16  ;;  %v955_v17 = vmov (!%p150_p9), 1   ;;  %v906_v34 = vld [vmem:[%s1120_s1 + $0x10] sm:$0xff] (!%p150_p9)   ;;  %vm313_vm3 = vcmask (!%p150_p9), 261120   ;;  %v907_v46 = vld [vmem:[%s1120_s1 + $0x18] sm:$0xff] (!%p150_p9)   ;;  %s1070_s18 = scalar_lea.vmem (!%p150_p9), [#allocation3], %s1018_s26 }
  0x1e   : > { %v177_v4 = vld [vmem:[%s158_s3] sm:$0xff] (!%p150_p9)  ;;  %v1044_v15 = vpack.i.bf16 (!%p150_p9), %v776_v11, %v775_v10  ;;  %879 = vset.pattern.permute.xlu1 (!%p150_p9), %v955_v17  ;;  %v956_v35 = vmov (!%p150_p9), 2   ;;  %vm373_vm4 = vcmask (!%p150_p9), 130048   ;;  %v957_v47 = vmov (!%p150_p9), 3   ;;  %v178_v57 = vld [vmem:[%s158_s3 + $0x8] sm:$0xff] (!%p150_p9) }
  0x1f   : > { %v179_v9 = vpack.c.bf16 (!%p150_p9), %v177_v4, %v177_v4  ;;  %v1036_v12 = vpack.i.bf16 (!%p150_p9), %v772_v7, %v1030_v6  ;;  %vm425_vm5 = vcmask (!%p150_p9), 1042432   ;;  %v908_v0 = vld [vmem:[%s1120_s1 + $0x20] sm:$0xff] (!%p150_p9)   ;;  %v909_v1 = vld [vmem:[%s1120_s1 + $0x28] sm:$0xff] (!%p150_p9)   ;;  %v958_v2 = vmov (!%p150_p9), 4   ;;  %v910_v17 = vld [vmem:[%s1120_s1 + $0x30] sm:$0xff] (!%p150_p9)  }
  0x21   : > { %835 = vmatprep.subr.msk.bf16.mxu0 (!%p150_p9), %vm241_vm1, %v179_v9  ;;  %v243_v13 = vsel (!%p150_p9), %vm241_vm1, %v179_v9, 0  ;;  %870 = vperm.xlu0 (!%p150_p9), %868, %v1036_v12  }
  0x22   : > { %796 = vmatpush3.bf16.msra.mxu0 (!%p150_p9), %v243_v13  ;;  %881 = vperm.xlu1 (!%p150_p9), %879, %v1036_v12  }
  0x23   : > { %809 = vmatprep.subr.bf16.mxu0 %v953_v16  ;;  %s766_s27 = sshll.u32 (%p1005_p5), %s740_s12, 3 }
  0x24   : > { %s647_s30 = scalar_lea.vmem (%p1005_p5), %s1121_s2, %s766_s27 }
  0x25   : > { %798 = vmatmul.mubr.msk.bf16.vlgmr.msra.gmra.mrb[0].mxu0 %vm234_vm0, %v905_v14  ;;  %875 = vperm.xlu0 %868, %v1044_v15  }
  0x26   : > { %811 = vmatprep.mubr.msk.bf16.mxu0 %vm954_vm2, %v953_v16  ;;  %885 = vset.pattern.permute.xlu1 %v956_v35 }
  0x27   : > { %362 = vperm.xlu1 %885, %v1030_v6  }
  0x29   : > { %886 = vset.pattern.permute.xlu0 %v957_v47 }
  0x2a   : > { %888 = vperm.xlu0 %886, %v1036_v12  }
  0x2b   : > { %892 = vset.pattern.permute.xlu1 %v958_v2 }
  0x2c   : > { %894 = vperm.xlu1 %892, %v1036_v12   ;;  %v959_v12 = vmov 5  }
  0x2e   : > { %903 = vset.pattern.permute.xlu0 %v959_v12 }
  0x2f   : > { %579 = vperm.xlu0 %903, %v1030_v6   ;;  %v911_v6 = vld [vmem:[%s1120_s1 + $0x38] sm:$0xff]  }
  0x30   : > { %899 = vperm.xlu1 %892, %v1044_v15  }
  0xa0   : > { %v871_v18 = vpop.permute.xlu0 %870 }
  0xa1   : > { %v882_v36 = vpop.permute.xlu1 %881 }
  0xa4   : > { %v876_v19 = vpop.permute.xlu0 %875 }
  0xa6   : > { %v363_v48 = vpop.permute.xlu1 %362 }
  0xa9   : > { %v889_v3 = vpop.permute.xlu0 %888 }
  0xab   : > { %v895_v15 = vpop.permute.xlu1 %894 }
  0xf8   : > { %v799_v20 = vpop.f32.mrb[0].mxu0 }
  0xf9   : > { %v916_v21 = vadd.low.f32.bf16 %v799_v20, %v876_v19  ;;  %v279_v22 = vpop.f32.mrb[1].mxu0 }
  0xfa   : > { %v917_v23 = vadd.low.f32.bf16 %v279_v22, %v871_v18  ;;  %v800_v24 = vpop.f32.mrb[2].mxu0 }
  0xfb   : > { %v918_v25 = vadd.high.f32.bf16 %v800_v24, %v876_v19  ;;  %v282_v26 = vpop.f32.mrb[3].mxu0  ;;  %v296_v28 = vmax.f32 %v916_v21, 0.0 }
  0xfc   : > { %v919_v27 = vadd.high.f32.bf16 %v282_v26, %v871_v18  ;;  %v294_v30 = vmax.f32 %v917_v23, 0.0  ;;  %v900_v18 = vpop.permute.xlu1 %899 }
  0xfd   : > { %v297_v29 = vmax.f32 %v918_v25, 0.0 }
  0xfe   : > { %v295_v31 = vmax.f32 %v919_v27, 0.0 }
  0xff   : > { %v299_v32 = vpack.c.bf16 %v297_v29, %v296_v28 }
 0x100   : > { %v298_v33 = vpack.c.bf16 %v295_v31, %v294_v30 }
 0x102   : > { %802 = vmatpush3.bf16.msra.mxu1 %v298_v33  ;;  %v580_v33 = vpop.permute.xlu0 %579 }
 0x103   : > { %803 = vmatprep.subr.bf16.mxu1 %v953_v16 }
 0x106   : > { %804 = vmatpush3.bf16.msra.mxu1 %v299_v32 }
 0x107   : > { %815 = vmatprep.subr.bf16.mxu1 %v953_v16 }
 0x109   : > { %806 = vmatmul.mubr.msk.bf16.vlgmr.msra.gmra.mrb[0].mxu1 %vm313_vm3, %v906_v34 }
 0x10a   : > { %817 = vmatprep.mubr.msk.bf16.mxu1 %vm954_vm2, %v953_v16 }
 0x1dc   : > { %v351_v37 = vpop.f32.mrb[0].mxu1 }
 0x1dd   : > { %v920_v38 = vadd.low.f32.bf16 %v351_v37, %v882_v36  ;;  %v807_v39 = vpop.f32.mrb[1].mxu1 }
 0x1de   : > { %v354_v40 = vpop.f32.mrb[2].mxu1 }
 0x1df   : > { %v921_v41 = vadd.high.f32.bf16 %v354_v40, %v882_v36  ;;  %v808_v42 = vpop.f32.mrb[3].mxu1  ;;  %v358_v43 = vmax.f32 %v920_v38, 0.0 }
 0x1e1   : > { %v359_v44 = vmax.f32 %v921_v41, 0.0 }
 0x1e3   : > { %v360_v45 = vpack.c.bf16 %v359_v44, %v358_v43 }
 0x1e5   : > { %810 = vmatpush3.bf16.msra.mxu0 %v360_v45 }
 0x1e8   : > { %812 = vmatmul.mubr.msk.bf16.vlgmr.msra.gmra.mrb[4].mxu0 %vm373_vm4, %v907_v46 }
 0x1e9   : > { %823 = vmatprep.mubr.msk.bf16.mxu0 %vm373_vm4, %v909_v1 }
 0x2bb   : > { %v411_v49 = vpop.f32.mrb[4].mxu0 }
 0x2bc   : > { %v412_v50 = vadd.f32 %v411_v49, %v363_v48  ;;  %v813_v51 = vpop.f32.mrb[5].mxu0 }
 0x2bd   : > { %v414_v52 = vpop.f32.mrb[6].mxu0 }
 0x2be   : > { %v417_v53 = vmul.f32 0.5, %v412_v50  ;;  %638 = vst [vmem:[%s1070_s18 + $0x8] sm:$0xff] %v412_v50  ;;  %v814_v54 = vpop.f32.mrb[7].mxu0 }
 0x2c0   : > { %v418_v55 = vmul.f32 1.442695, %v417_v53 }
 0x2c2   : > { %912 = vpow2.f32 %v418_v55 }
 0x2c5   : > { %v679_v43 = vld [vmem:[%s1070_s18 + $0x8] sm:$0xff] (%p1005_p5) }
 0x2c6   : > { %680 = vst [vmem:[%s647_s30 + $0x10] sm:$0xff] (%p1005_p5), %v679_v43 }
 0x2cc   : > { %v913_v56 = vpop.eup %912 }
 0x2cd   : > { %v421_v58 = vrot.slane %v913_v56, 3 }
 0x2cf   : > { %v423_v59 = vmul.f32 %v421_v58, %v178_v57 }
 0x2d1   : > { %v424_v60 = vadd.f32 %v423_v59, %v412_v50 }
 0x2d3   : > { %v426_v61 = vsel %vm425_vm5, %v424_v60, 0.0 }
 0x2d4   : > { %v427_v62 = vpack.c.bf16 %v426_v61, %v426_v61 }
 0x2d6   : > { %v445_v63 = vsel %vm241_vm1, %v427_v62, 0 }
 0x2d7   : > { %816 = vmatpush3.bf16.msra.mxu1 %v445_v63 }
 0x2d8   : > { %827 = vmatprep.subr.bf16.mxu1 %v953_v16 }
 0x2da   : > { %818 = vmatmul.mubr.msk.bf16.vlgmr.msra.gmra.mrb[4].mxu1 %vm234_vm0, %v908_v0 }
 0x2db   : > { %831 = vmatprep.mubr.msk.bf16.mxu1 %vm954_vm2, %v953_v16 }
 0x3ad   : > { %v481_v4 = vpop.f32.mrb[4].mxu1 }
 0x3ae   : > { %v922_v5 = vadd.low.f32.bf16 %v481_v4, %v889_v3  ;;  %v819_v7 = vpop.f32.mrb[5].mxu1 }
 0x3af   : > { %v484_v8 = vpop.f32.mrb[6].mxu1 }
 0x3b0   : > { %v923_v9 = vadd.high.f32.bf16 %v484_v8, %v889_v3  ;;  %v820_v10 = vpop.f32.mrb[7].mxu1  ;;  %v488_v11 = vmax.f32 %v922_v5, 0.0 }
 0x3b2   : > { %v489_v13 = vmax.f32 %v923_v9, 0.0 }
 0x3b4   : > { %v490_v14 = vpack.c.bf16 %v489_v13, %v488_v11 }
 0x3b6   : > { %821 = vmatprep.subr.bf16.mxu0 %v490_v14 }
 0x3b7   : > { %822 = vmatpush3.bf16.msra.mxu0 %v490_v14 }
 0x3ba   : > { %824 = vmatmul.mubr.msk.bf16.vlgmr.msra.gmra.mrb[8].mxu0 %vm373_vm4, %v910_v17 }
 0x48d   : > { %v825_v19 = vpop.f32.mrb[8].mxu0 }
 0x48e   : > { %v557_v20 = vpop.f32.mrb[9].mxu0  ;;  %v924_v21 = vadd.low.f32.bf16 %v825_v19, %v900_v18 }
 0x48f   : > { %v925_v22 = vadd.low.f32.bf16 %v557_v20, %v895_v15  ;;  %v826_v23 = vpop.f32.mrb[10].mxu0 }
 0x490   : > { %v926_v24 = vadd.high.f32.bf16 %v826_v23, %v900_v18  ;;  %v560_v25 = vpop.f32.mrb[11].mxu0  ;;  %v574_v27 = vmax.f32 %v924_v21, 0.0 }
 0x491   : > { %v927_v26 = vadd.high.f32.bf16 %v560_v25, %v895_v15  ;;  %v572_v29 = vmax.f32 %v925_v22, 0.0 }
 0x492   : > { %v575_v28 = vmax.f32 %v926_v24, 0.0 }
 0x493   : > { %v573_v30 = vmax.f32 %v927_v26, 0.0 }
 0x494   : > { %v577_v31 = vpack.c.bf16 %v575_v28, %v574_v27 }
 0x495   : > { %v576_v32 = vpack.c.bf16 %v573_v30, %v572_v29 }
 0x497   : > { %828 = vmatpush3.bf16.msra.mxu1 %v576_v32 }
 0x498   : > { %829 = vmatprep.subr.bf16.mxu1 %v953_v16 }
 0x49b   : > { %830 = vmatpush3.bf16.msra.mxu1 %v577_v31 }
 0x49e   : > { %832 = vmatmul.mubr.msk.bf16.vlgmr.msra.gmra.mrb[8].mxu1 %vm313_vm3, %v911_v6 }
 0x571   : > { %v627_v34 = vpop.f32.mrb[8].mxu1 }
 0x572   : > { %v833_v35 = vpop.f32.mrb[9].mxu1  ;;  %v628_v36 = vadd.f32 %v627_v34, %v580_v33 }
 0x573   : > { %v630_v37 = vpop.f32.mrb[10].mxu1 }
 0x574   : > { %v633_v38 = vmul.f32 0.5, %v628_v36  ;;  %v834_v39 = vpop.f32.mrb[11].mxu1 }
 0x576   : > { %914 = vtanh.f32 %v633_v38 }
 0x57f   : > { %645 = sbr.rel (!%p1005_p5) target bundleno = 1422 (0x58e), region = 70 }
 0x580   : > { %v915_v40 = vpop.eup %914 }
 0x581   : > { %v635_v41 = vmul.f32 0.5, %v915_v40 }
 0x583   : > { %v636_v42 = vadd.f32 0.5, %v635_v41 }
 0x585   : > { %637 = vst [vmem:[%s1070_s18] sm:$0xff] %v636_v42 }
 0x58c   : > { %v677_v16 = vld [vmem:[%s1070_s18] sm:$0xff] }
 0x58d   : > { %678 = vst [vmem:[%s647_s30] sm:$0xff] %v677_v16 }
 0x58e PF: > { %p9_p10 = scmp.ge.s32.totalorder %s992_s13, 4   ;;  %s1123_s9 = smov %s946_s10 }
 0x58f   : > { %s1124_s10 = smov %s1003_s16  ;;  %s1125_s11 = smov %s992_s13 }
 0x590   :  { %11 = sbr.rel (!%p9_p10) target bundleno = 2 (0x2), region = 139 }

</bundles_post_ra>
